<compile_context>
chip_gen: v7x
topology: tpu7x:2x2x1
jax: 0.10.0
libtpu: 0.0.40
codegen_flags: <defaults>
</compile_context>

<pallas_src>
import functools

import jax
import jax.numpy as jnp
from jax.experimental import pallas as pl
from jax.experimental.pallas import tpu as pltpu

_DEFAULT_TILE_B = 1024   # rows per grid step (sweepable; ~5-6 MiB working set)
_OUT_PAD = 8             # pad final out_dim up to a multiple of this


def _round_up(x, m):
    return ((x + m - 1) // m) * m


def _critic_kernel(x_ref, w1_ref, b1_ref, w2_ref, b2_ref, w3_ref, b3_ref, o_ref):
    # In-kernel bf16 cast of the x tile (VPU; hides under MXU work).
    x = x_ref[...].astype(jnp.bfloat16)

    # Layer 1: Linear(784 -> 512) + LeakyReLU(0.2).  bf16 operands, f32 acc.
    h = jnp.dot(x, w1_ref[...], preferred_element_type=jnp.float32) + b1_ref[...]
    h = jnp.maximum(h, 0.2 * h)

    # Layer 2: Linear(512 -> 256) + LeakyReLU(0.2)
    h = jnp.dot(h.astype(jnp.bfloat16), w2_ref[...],
                preferred_element_type=jnp.float32) + b2_ref[...]
    h = jnp.maximum(h, 0.2 * h)

    # Layer 3: Linear(256 -> out_dim padded to 8) + Sigmoid
    h = jnp.dot(h.astype(jnp.bfloat16), w3_ref[...],
                preferred_element_type=jnp.float32) + b3_ref[...]
    o_ref[...] = jax.nn.sigmoid(h)


def prepare_critic_params(params):
    """One-time preparation: bf16-cast the weights and pad the tiny final layer
    to a multiple of 8 output columns.  Call once, reuse across forward calls."""
    w1, b1, w2, b2, w3, b3 = params
    out_dim = w3.shape[1]
    n3 = _round_up(out_dim, _OUT_PAD)

    w3p = jnp.zeros((w3.shape[0], n3), jnp.bfloat16).at[:, :out_dim].set(
        w3.astype(jnp.bfloat16))
    b3p = jnp.zeros((1, n3), jnp.float32).at[:, :out_dim].set(
        jnp.reshape(b3, (1, -1)).astype(jnp.float32))

    prepared = (
        w1.astype(jnp.bfloat16), jnp.reshape(b1, (1, -1)).astype(jnp.float32),
        w2.astype(jnp.bfloat16), jnp.reshape(b2, (1, -1)).astype(jnp.float32),
        w3p, b3p,
    )
    return prepared, out_dim


@functools.partial(jax.jit, static_argnames=("out_dim", "tile_b"))
def critic_forward(x, prepared, *, out_dim, tile_b=_DEFAULT_TILE_B):
    """x: any shape with 784 elements per row (e.g. (B,1,28,28)), like
    x.view(-1, 784).  `prepared` comes from prepare_critic_params().
    Returns (B, out_dim) sigmoid outputs in f32."""
    w1_bf, b1_f, w2_bf, b2_f, w3_bf, b3_f = prepared
    in_dim = w1_bf.shape[0]
    n3 = w3_bf.shape[1]

    x2d = x.reshape(-1, in_dim)          # metadata-only reshape; no staging copy
    B = x2d.shape[0]

    # Batch tile: sublane-aligned, <= tile_b, and chosen so the grid has >= 2
    # steps whenever B allows it (keeps both v7x TensorCores busy; harmless on
    # single-TC v5e/v6e).  The last grid block may be partial; Pallas masks it.
    tb = max(8, min(tile_b, _round_up(pl.cdiv(B, 2), 8)))
    grid = (pl.cdiv(B, tb),)

    # Resident (non-tiled) operands: same block every step -> stay in VMEM.
    def resident(arr):
        return pl.BlockSpec(arr.shape, lambda i: (0, 0))

    out_p = pl.pallas_call(
        _critic_kernel,
        out_shape=jax.ShapeDtypeStruct((B, n3), jnp.float32),
        grid=grid,
        in_specs=[
            pl.BlockSpec((tb, in_dim), lambda i: (i, 0)),   # x tile (pipelined)
            resident(w1_bf), resident(b1_f),
            resident(w2_bf), resident(b2_f),
            resident(w3_bf), resident(b3_f),
        ],
        out_specs=pl.BlockSpec((tb, n3), lambda i: (i, 0)),
        compiler_params=pltpu.CompilerParams(
            dimension_semantics=("parallel",),   # shard batch across TCs (v7x)
            vmem_limit_bytes=32 << 20,           # tb=1024 working set ~12 MiB
        ),
    )(x2d, w1_bf, b1_f, w2_bf, b2_f, w3_bf, b3_f)

    return out_p[:, :out_dim]


def init_critic_params(key, input_dim=784, output_dim=1):
    """Deterministic init mimicking PyTorch nn.Linear default:
    U(-1/sqrt(fan_in), 1/sqrt(fan_in)) for both weight and bias.
    Weights stored as (in_features, out_features); params kept in f32."""
    dims = [(input_dim, 512), (512, 256), (256, output_dim)]
    params = []
    for fan_in, fan_out in dims:
        kw, kb, key = jax.random.split(key, 3)
        bound = 1.0 / jnp.sqrt(jnp.float32(fan_in))
        w = jax.random.uniform(kw, (fan_in, fan_out), jnp.float32, -bound, bound)
        b = jax.random.uniform(kb, (1, fan_out), jnp.float32, -bound, bound)
        params += [w, b]
    return tuple(params)


if __name__ == "__main__":
    key = jax.random.PRNGKey(0)
    k_x, k_p = jax.random.split(key)

    # Small batch of MNIST-shaped inputs (NCHW), flattened to 784 inside.
    x = jax.random.normal(k_x, (2, 1, 28, 28), jnp.float32)
    params = init_critic_params(k_p, input_dim=784, output_dim=1)
    prepared, out_dim = prepare_critic_params(params)

    out = jax.block_until_ready(critic_forward(x, prepared, out_dim=out_dim))
    assert out.shape == (2, 1), out.shape

    # Pure-JAX reference using the same bf16-operand / f32-accumulate math.
    w1, b1, w2, b2, w3, b3 = params
    bf = jnp.bfloat16
    h = x.reshape(-1, 784)
    h = jnp.dot(h.astype(bf), w1.astype(bf), preferred_element_type=jnp.float32) + b1
    h = jnp.maximum(h, 0.2 * h)
    h = jnp.dot(h.astype(bf), w2.astype(bf), preferred_element_type=jnp.float32) + b2
    h = jnp.maximum(h, 0.2 * h)
    h = jnp.dot(h.astype(bf), w3.astype(bf), preferred_element_type=jnp.float32) + b3
    ref = jax.nn.sigmoid(h)

    err = float(jnp.max(jnp.abs(out - ref)))
    assert jnp.allclose(out, ref, atol=2e-3, rtol=2e-3), err

    print("KERNEL_OK")
</pallas_src>

<mosaic_0001>
module attributes {stable_mosaic.version = 11 : i64} {
  func.func @_critic_kernel(%arg0: i32, %arg1: memref<8x784xf32, #tpu.memory_space<vmem>>, %arg2: memref<784x512xbf16, #tpu.memory_space<vmem>>, %arg3: memref<1x512xf32, #tpu.memory_space<vmem>>, %arg4: memref<512x256xbf16, #tpu.memory_space<vmem>>, %arg5: memref<1x256xf32, #tpu.memory_space<vmem>>, %arg6: memref<256x8xbf16, #tpu.memory_space<vmem>>, %arg7: memref<1x8xf32, #tpu.memory_space<vmem>>, %arg8: memref<8x8xf32, #tpu.memory_space<vmem>>) attributes {dimension_semantics = [#tpu.dimension_semantics<parallel>], iteration_bounds = array<i64: 1>, scalar_prefetch = 0 : i64, scratch_operands = 0 : i64, tpu.core_type = #tpu.core_type<tc>, window_params = [{transform_indices = @transform_0, window_bounds = array<i64: 8, 784>}, {pipeline_mode = #tpu.pipeline_mode<synchronous>, transform_indices = @transform_1, window_bounds = array<i64: 784, 512>}, {pipeline_mode = #tpu.pipeline_mode<synchronous>, transform_indices = @transform_2, window_bounds = array<i64: 1, 512>}, {pipeline_mode = #tpu.pipeline_mode<synchronous>, transform_indices = @transform_3, window_bounds = array<i64: 512, 256>}, {pipeline_mode = #tpu.pipeline_mode<synchronous>, transform_indices = @transform_4, window_bounds = array<i64: 1, 256>}, {pipeline_mode = #tpu.pipeline_mode<synchronous>, transform_indices = @transform_5, window_bounds = array<i64: 256, 8>}, {pipeline_mode = #tpu.pipeline_mode<synchronous>, transform_indices = @transform_6, window_bounds = array<i64: 1, 8>}, {transform_indices = @transform_7, window_bounds = array<i64: 8, 8>}]} {
    %c0 = arith.constant 0 : index
    %c0_0 = arith.constant 0 : index
    %0 = vector.load %arg1[%c0, %c0_0] : memref<8x784xf32, #tpu.memory_space<vmem>>, vector<8x784xf32>
    %1 = arith.truncf %0 : vector<8x784xf32> to vector<8x784xbf16>
    %c0_1 = arith.constant 0 : index
    %c0_2 = arith.constant 0 : index
    %2 = vector.load %arg2[%c0_1, %c0_2] : memref<784x512xbf16, #tpu.memory_space<vmem>>, vector<784x512xbf16>
    %cst = arith.constant dense<0.000000e+00> : vector<8x512xf32>
    %3 = tpu.matmul %1, %2, %cst {dimension_numbers = #tpu.dot_dimension_numbers<[1], [0], [0], [1], [0, 0, 1, 1], [], []>} : vector<8x784xbf16>, vector<784x512xbf16>, vector<8x512xf32> -> vector<8x512xf32>
    %c0_3 = arith.constant 0 : index
    %c0_4 = arith.constant 0 : index
    %4 = vector.load %arg3[%c0_3, %c0_4] : memref<1x512xf32, #tpu.memory_space<vmem>>, vector<1x512xf32>
    %5 = vector.broadcast %4 : vector<1x512xf32> to vector<8x512xf32>
    %6 = arith.addf %3, %5 : vector<8x512xf32>
    %cst_5 = arith.constant 2.000000e-01 : f32
    %7 = vector.broadcast %cst_5 : f32 to vector<8x512xf32>
    %8 = arith.mulf %7, %6 : vector<8x512xf32>
    %9 = arith.maximumf %6, %8 : vector<8x512xf32>
    %10 = arith.truncf %9 : vector<8x512xf32> to vector<8x512xbf16>
    %c0_6 = arith.constant 0 : index
    %c0_7 = arith.constant 0 : index
    %11 = vector.load %arg4[%c0_6, %c0_7] : memref<512x256xbf16, #tpu.memory_space<vmem>>, vector<512x256xbf16>
    %cst_8 = arith.constant dense<0.000000e+00> : vector<8x256xf32>
    %12 = tpu.matmul %10, %11, %cst_8 {dimension_numbers = #tpu.dot_dimension_numbers<[1], [0], [0], [1], [0, 0, 1, 1], [], []>} : vector<8x512xbf16>, vector<512x256xbf16>, vector<8x256xf32> -> vector<8x256xf32>
    %c0_9 = arith.constant 0 : index
    %c0_10 = arith.constant 0 : index
    %13 = vector.load %arg5[%c0_9, %c0_10] : memref<1x256xf32, #tpu.memory_space<vmem>>, vector<1x256xf32>
    %14 = vector.broadcast %13 : vector<1x256xf32> to vector<8x256xf32>
    %15 = arith.addf %12, %14 : vector<8x256xf32>
    %cst_11 = arith.constant 2.000000e-01 : f32
    %16 = vector.broadcast %cst_11 : f32 to vector<8x256xf32>
    %17 = arith.mulf %16, %15 : vector<8x256xf32>
    %18 = arith.maximumf %15, %17 : vector<8x256xf32>
    %19 = arith.truncf %18 : vector<8x256xf32> to vector<8x256xbf16>
    %c0_12 = arith.constant 0 : index
    %c0_13 = arith.constant 0 : index
    %20 = vector.load %arg6[%c0_12, %c0_13] : memref<256x8xbf16, #tpu.memory_space<vmem>>, vector<256x8xbf16>
    %cst_14 = arith.constant dense<0.000000e+00> : vector<8x8xf32>
    %21 = tpu.matmul %19, %20, %cst_14 {dimension_numbers = #tpu.dot_dimension_numbers<[1], [0], [0], [1], [0, 0, 1, 1], [], []>} : vector<8x256xbf16>, vector<256x8xbf16>, vector<8x8xf32> -> vector<8x8xf32>
    %c0_15 = arith.constant 0 : index
    %c0_16 = arith.constant 0 : index
    %22 = vector.load %arg7[%c0_15, %c0_16] : memref<1x8xf32, #tpu.memory_space<vmem>>, vector<1x8xf32>
    %23 = vector.broadcast %22 : vector<1x8xf32> to vector<8x8xf32>
    %24 = arith.addf %21, %23 : vector<8x8xf32>
    %25 = arith.negf %24 : vector<8x8xf32>
    %26 = math.exp %25 : vector<8x8xf32>
    %cst_17 = arith.constant 1.000000e+00 : f32
    %27 = vector.broadcast %cst_17 : f32 to vector<8x8xf32>
    %28 = arith.addf %27, %26 : vector<8x8xf32>
    %29 = arith.divf %27, %28 : vector<8x8xf32>
    %c0_18 = arith.constant 0 : index
    %c0_19 = arith.constant 0 : index
    %30 = vector.load %arg8[%c0_18, %c0_19] : memref<8x8xf32, #tpu.memory_space<vmem>>, vector<8x8xf32>
    tpu.vector_store %arg8[%c0_18, %c0_19], %29 {strides = array<i32>} : memref<8x8xf32, #tpu.memory_space<vmem>>, vector<8x8xf32>,
    return
  }
  func.func @transform_0(%arg0: i32) -> (i32, i32) {
    %c0_i32 = arith.constant 0 : i32
    %c0_i32_0 = arith.constant 0 : i32
    return %arg0, %c0_i32 : i32, i32
  }
  func.func @transform_1(%arg0: i32) -> (i32, i32) {
    %c0_i32 = arith.constant 0 : i32
    %c0_i32_0 = arith.constant 0 : i32
    %c0_i32_1 = arith.constant 0 : i32
    return %c0_i32, %c0_i32_0 : i32, i32
  }
  func.func @transform_2(%arg0: i32) -> (i32, i32) {
    %c0_i32 = arith.constant 0 : i32
    %c0_i32_0 = arith.constant 0 : i32
    %c0_i32_1 = arith.constant 0 : i32
    return %c0_i32, %c0_i32_0 : i32, i32
  }
  func.func @transform_3(%arg0: i32) -> (i32, i32) {
    %c0_i32 = arith.constant 0 : i32
    %c0_i32_0 = arith.constant 0 : i32
    %c0_i32_1 = arith.constant 0 : i32
    return %c0_i32, %c0_i32_0 : i32, i32
  }
  func.func @transform_4(%arg0: i32) -> (i32, i32) {
    %c0_i32 = arith.constant 0 : i32
    %c0_i32_0 = arith.constant 0 : i32
    %c0_i32_1 = arith.constant 0 : i32
    return %c0_i32, %c0_i32_0 : i32, i32
  }
  func.func @transform_5(%arg0: i32) -> (i32, i32) {
    %c0_i32 = arith.constant 0 : i32
    %c0_i32_0 = arith.constant 0 : i32
    %c0_i32_1 = arith.constant 0 : i32
    return %c0_i32, %c0_i32_0 : i32, i32
  }
  func.func @transform_6(%arg0: i32) -> (i32, i32) {
    %c0_i32 = arith.constant 0 : i32
    %c0_i32_0 = arith.constant 0 : i32
    %c0_i32_1 = arith.constant 0 : i32
    return %c0_i32, %c0_i32_0 : i32, i32
  }
  func.func @transform_7(%arg0: i32) -> (i32, i32) {
    %c0_i32 = arith.constant 0 : i32
    %c0_i32_0 = arith.constant 0 : i32
    return %arg0, %c0_i32 : i32, i32
  }
}

</mosaic_0001>

<bundles_post_ra>
// kernel: critic_forward.1
= control target key start
LH: loop header
LB: loop body
LE: loop exit
PB: predicated region body
PF: predicated region fallthrough
CT: control target
= control target key end

     0   :  { %12 = vsyncpa [#allocation3], 0  ;;  %s3437_s0 = inlined_call_operand.vmem [shape: f32[2,784], index: 0, kind: input, shape index: {}]   ;;  %s3438_s1 = inlined_call_operand.hbm [shape: bf16[784,512], index: 1, kind: input, shape index: {}]   ;;  %s3439_s2 = inlined_call_operand.vmem [shape: f32[1,512], index: 2, kind: input, shape index: {}]   ;;  %s3440_s3 = inlined_call_operand.hbm [shape: bf16[512,256], index: 3, kind: input, shape index: {}]   ;;  %s3441_s4 = inlined_call_operand.vmem [shape: f32[1,256], index: 4, kind: input, shape index: {}]   ;;  %s3442_s5 = inlined_call_operand.vmem [shape: bf16[256,8], index: 5, kind: input, shape index: {}]   ;;  %s3443_s6 = inlined_call_operand.vmem [shape: f32[1,8], index: 6, kind: input, shape index: {}]   ;;  %s3444_s7 = inlined_call_operand.vmem [shape: f32[2,8], index: 7, kind: output, shape index: {}]  }
   0x1   :  { %13 = vsyncpa [#allocation5], 0  ;;  %s3216_s24 = smov [#allocation2]   ;;  %s3168_s28 = scalar_lea.hbm %s3438_s1, 25088 }
   0x2   :  { %s21_s25 = sshll.u32 %s3216_s24, 4  ;;  %p3169_p0 = scmp.ne.s32.totalorder %s3438_s1, %s3168_s28  ;;  %s22_s25 = int_to_ptr.vmem [resolvable:$true] %s21_s25 }
   0x3   :  { %p3172_p1 = scmp.lt.u32.totalorder %s3168_s28, %s3438_s1 }
   0x5   :  { %p3174_p2 = pnand %p3172_p1, %p3169_p0 }
   0x7   :  { %3177 = shalt.err (!%p3174_p2)
}
   0x8   :  { %s3178_s10 = scalar_lea.vmem %s22_s25, 25088  ;;  %p3183_p4 = scmp.lt.s32.totalorder %s22_s25, %s22_s25 }
   0x9   :  { %p3179_p3 = scmp.ne.s32.totalorder %s22_s25, %s3178_s10  ;;  %p3184_p5 = scmp.lt.s32.totalorder %s3178_s10, %s3178_s10 }
   0xb   :  { %p3185_p6 = por %p3184_p5, %p3183_p4 }
   0xd   :  { %p3186_p7 = pnand %p3185_p6, %p3179_p3 }
   0xf   :  { %3189 = shalt.err (!%p3186_p7)
}
  0x10   :  { %s3217_s11 = smov 256   ;;  %s3218_s12 = smov 16  }
  0x11   :  { %27 = dma.hbm_to_vmem [thread:$0]  %s3438_s1, 25088, %s22_s25, [#allocation3], %s3217_s11, %s3217_s11, %s3218_s12  }
  0x12   :  { %s3219_s15 = smov [#allocation4]   ;;  %s3190_s19 = scalar_lea.hbm %s3440_s3, 8192 }
  0x13   :  { %s35_s16 = sshll.u32 %s3219_s15, 4  ;;  %p3191_p8 = scmp.ne.s32.totalorder %s3440_s3, %s3190_s19  ;;  %s36_s16 = int_to_ptr.vmem [resolvable:$true] %s35_s16 }
  0x14   :  { %p3194_p9 = scmp.lt.u32.totalorder %s3190_s19, %s3440_s3 }
  0x16   :  { %p3196_p10 = pnand %p3194_p9, %p3191_p8 }
  0x18   :  { %3199 = shalt.err (!%p3196_p10)
}
  0x19   :  { %s3200_s24 = scalar_lea.vmem %s36_s16, 8192  ;;  %p3205_p12 = scmp.lt.s32.totalorder %s36_s16, %s36_s16 }
  0x1a   :  { %p3201_p11 = scmp.ne.s32.totalorder %s36_s16, %s3200_s24  ;;  %p3206_p13 = scmp.lt.s32.totalorder %s3200_s24, %s3200_s24 }
  0x1c   :  { %p3207_p0 = por %p3206_p13, %p3205_p12 }
  0x1e   :  { %p3208_p1 = pnand %p3207_p0, %p3201_p11 }
  0x20   :  { %3211 = shalt.err (!%p3208_p1)
}
  0x21   :  { %s3220_s1 = smov 128   ;;  %s3221_s25 = smov 8  }
  0x22   :  { %41 = dma.hbm_to_vmem [thread:$0]  %s3440_s3, 8192, %s36_s16, [#allocation5], %s3220_s1, %s3220_s1, %s3221_s25  }
  0x23   :  { %3212 = dma.done.wait [#allocation3], 25088  }
  0x24   :  { %3213 = vsyncadd [#allocation3], 4294942208 }
  0x25   :  { %3214 = dma.done.wait [#allocation5], 8192  }
  0x26   :  { %3215 = vsyncadd [#allocation5], 4294959104  ;;  %v2746_v0 = vld [vmem:[#allocation2 + $0x4] ss:$16 sps:$4 sm:$0xff]   ;;  %v2750_v2 = vld [vmem:[#allocation2] ss:$16 sps:$4 sm:$0xff]   ;;  %v78_v40 = vlaneseq }
  0x27   :  { %v2748_v1 = vld [vmem:[#allocation2 + $0x204] ss:$16 sps:$4 sm:$0xff]   ;;  %1358 = vmatprep.subr.bf16.mxu1 %v2746_v0  ;;  %v2751_v3 = vld [vmem:[#allocation2 + $0x200] ss:$16 sps:$4 sm:$0xff]   ;;  %v3222_v38 = vmov 1983009808  }
  0x28   :  { %1399 = vmatprep.subr.bf16.mxu0 %v2748_v1  ;;  %v2752_v4 = vld [vmem:[#allocation2 + $0x24] ss:$16 sps:$4 sm:$0xff]   ;;  %1359 = vmatpush1.bf16.msra.mxu1 %v2750_v2  ;;  %v2756_v6 = vld [vmem:[#allocation2 + $0x20] ss:$16 sps:$4 sm:$0xff]   ;;  %v76_v39 = vunpack.c.l.s4 %v3222_v38  ;;  %v3288_v46 = vshrl.u32 %v78_v40, 7  ;;  %vm1354_vm0 = vcmask 130048  }
  0x29   :  { %1400 = vmatpush1.bf16.msra.mxu0 %v2751_v3  ;;  %v2754_v5 = vld [vmem:[#allocation2 + $0x224] ss:$16 sps:$4 sm:$0xff]   ;;  %1360 = vmatprep.subr.bf16.mxu1 %v2752_v4  ;;  %v2757_v7 = vld [vmem:[#allocation2 + $0x220] ss:$16 sps:$4 sm:$0xff]   ;;  %v2844_v57 = vld [vmem:[%s3437_s0 + $0x1c] ss:$14 sps:$4 sm:$0xff]  }
  0x2a   :  { %1401 = vmatprep.subr.bf16.mxu0 %v2754_v5  ;;  %v2758_v8 = vld [vmem:[#allocation2 + $0x44] ss:$16 sps:$4 sm:$0xff]   ;;  %v2762_v10 = vld [vmem:[#allocation2 + $0x40] ss:$16 sps:$4 sm:$0xff]   ;;  %v77_v45 = vunpack.c.0.s8 %v76_v39  ;;  %v2877_v39 = vld [vmem:[#allocation2 + $0x8c] ss:$16 sps:$4 sm:$0xff]  }
  0x2b   :  { %v2760_v9 = vld [vmem:[#allocation2 + $0x244] ss:$16 sps:$4 sm:$0xff]   ;;  %v2763_v11 = vld [vmem:[#allocation2 + $0x240] ss:$16 sps:$4 sm:$0xff]   ;;  %vm2363_vm1 = vcmask 64512  }
  0x2c   :  { %1361 = vmatpush1.bf16.msra.mxu1 %v2756_v6  ;;  %v2764_v12 = vld [vmem:[#allocation2 + $0x64] ss:$16 sps:$4 sm:$0xff]   ;;  %v2768_v14 = vld [vmem:[#allocation2 + $0x60] ss:$16 sps:$4 sm:$0xff]   ;;  %v3291_v53 = vsub.s32 %v77_v45, %v3288_v46  ;;  %v2881_v45 = vld [vmem:[#allocation2 + $0xa8] ss:$16 sps:$4 sm:$0xff]  }
  0x2d   :  { %1402 = vmatpush1.bf16.msra.mxu0 %v2757_v7  ;;  %1362 = vmatprep.subr.bf16.mxu1 %v2758_v8  ;;  %v2766_v13 = vld [vmem:[#allocation2 + $0x264] ss:$16 sps:$4 sm:$0xff]   ;;  %v2769_v15 = vld [vmem:[#allocation2 + $0x260] ss:$16 sps:$4 sm:$0xff]  }
  0x2e   :  { %1403 = vmatprep.subr.bf16.mxu0 %v2760_v9  ;;  %v2770_v16 = vld [vmem:[#allocation2 + $0x84] ss:$16 sps:$4 sm:$0xff]   ;;  %v2774_v18 = vld [vmem:[#allocation2 + $0x80] ss:$16 sps:$4 sm:$0xff]   ;;  %v95_v61 = vrot.slane %v2844_v57, %v3291_v53 }
  0x2f   :  { %v2772_v17 = vld [vmem:[#allocation2 + $0x284] ss:$16 sps:$4 sm:$0xff]   ;;  %v2775_v19 = vld [vmem:[#allocation2 + $0x280] ss:$16 sps:$4 sm:$0xff]  }
  0x30   :  { %1363 = vmatpush1.bf16.msra.mxu1 %v2762_v10  ;;  %v2776_v20 = vld [vmem:[#allocation2 + $0xa4] ss:$16 sps:$4 sm:$0xff]   ;;  %v2780_v22 = vld [vmem:[#allocation2 + $0xa0] ss:$16 sps:$4 sm:$0xff]  }
  0x31   :  { %1404 = vmatpush1.bf16.msra.mxu0 %v2763_v11  ;;  %1364 = vmatprep.subr.bf16.mxu1 %v2764_v12  ;;  %v2778_v21 = vld [vmem:[#allocation2 + $0x2a4] ss:$16 sps:$4 sm:$0xff]   ;;  %v2781_v23 = vld [vmem:[#allocation2 + $0x2a0] ss:$16 sps:$4 sm:$0xff]  }
  0x32   :  { %1405 = vmatprep.subr.bf16.mxu0 %v2766_v13  ;;  %v2782_v24 = vld [vmem:[#allocation2 + $0xc4] ss:$16 sps:$4 sm:$0xff]   ;;  %v2786_v26 = vld [vmem:[#allocation2 + $0xc0] ss:$16 sps:$4 sm:$0xff]  }
  0x33   :  { %v2784_v25 = vld [vmem:[#allocation2 + $0x2c4] ss:$16 sps:$4 sm:$0xff]   ;;  %v2787_v27 = vld [vmem:[#allocation2 + $0x2c0] ss:$16 sps:$4 sm:$0xff]  }
  0x34   :  { %1365 = vmatpush1.bf16.msra.mxu1 %v2768_v14  ;;  %v2788_v28 = vld [vmem:[#allocation2 + $0xe4] ss:$16 sps:$4 sm:$0xff]   ;;  %v2792_v30 = vld [vmem:[#allocation2 + $0xe0] ss:$16 sps:$4 sm:$0xff]  }
  0x35   :  { %1406 = vmatpush1.bf16.msra.mxu0 %v2769_v15  ;;  %1366 = vmatprep.subr.bf16.mxu1 %v2770_v16  ;;  %v2790_v29 = vld [vmem:[#allocation2 + $0x2e4] ss:$16 sps:$4 sm:$0xff]   ;;  %v2793_v31 = vld [vmem:[#allocation2 + $0x2e0] ss:$16 sps:$4 sm:$0xff]  }
  0x36   :  { %1407 = vmatprep.subr.bf16.mxu0 %v2772_v17  ;;  %v2794_v32 = vld [vmem:[#allocation2 + $0x104] ss:$16 sps:$4 sm:$0xff]   ;;  %v2798_v34 = vld [vmem:[#allocation2 + $0x100] ss:$16 sps:$4 sm:$0xff]  }
  0x37   :  { %v2796_v33 = vld [vmem:[#allocation2 + $0x304] ss:$16 sps:$4 sm:$0xff]   ;;  %v2799_v35 = vld [vmem:[#allocation2 + $0x300] ss:$16 sps:$4 sm:$0xff]  }
  0x38   :  { %1367 = vmatpush1.bf16.msra.mxu1 %v2774_v18  ;;  %v2800_v36 = vld [vmem:[#allocation2 + $0x124] ss:$16 sps:$4 sm:$0xff]   ;;  %v2804_v41 = vld [vmem:[#allocation2 + $0x120] ss:$16 sps:$4 sm:$0xff]  }
  0x39   :  { %1408 = vmatpush1.bf16.msra.mxu0 %v2775_v19  ;;  %1368 = vmatprep.subr.bf16.mxu1 %v2776_v20  ;;  %v2802_v37 = vld [vmem:[#allocation2 + $0x324] ss:$16 sps:$4 sm:$0xff]   ;;  %v2805_v42 = vld [vmem:[#allocation2 + $0x320] ss:$16 sps:$4 sm:$0xff]  }
  0x3a   :  { %1409 = vmatprep.subr.bf16.mxu0 %v2778_v21  ;;  %v2806_v43 = vld [vmem:[#allocation2 + $0x144] ss:$16 sps:$4 sm:$0xff]   ;;  %v2810_v47 = vld [vmem:[#allocation2 + $0x140] ss:$16 sps:$4 sm:$0xff]   ;;  %v2853_v21 = vld [vmem:[#allocation2 + $0xc] ss:$16 sps:$4 sm:$0xff]  }
  0x3b   :  { %v2808_v44 = vld [vmem:[#allocation2 + $0x344] ss:$16 sps:$4 sm:$0xff]   ;;  %v2811_v48 = vld [vmem:[#allocation2 + $0x340] ss:$16 sps:$4 sm:$0xff]  }
  0x3c   :  { %1369 = vmatpush1.bf16.msra.mxu1 %v2780_v22  ;;  %v2812_v49 = vld [vmem:[#allocation2 + $0x164] ss:$16 sps:$4 sm:$0xff]   ;;  %v2816_v51 = vld [vmem:[#allocation2 + $0x160] ss:$16 sps:$4 sm:$0xff]  }
  0x3d   :  { %1410 = vmatpush1.bf16.msra.mxu0 %v2781_v23  ;;  %1370 = vmatprep.subr.bf16.mxu1 %v2782_v24  ;;  %v2814_v50 = vld [vmem:[#allocation2 + $0x364] ss:$16 sps:$4 sm:$0xff]   ;;  %v2817_v52 = vld [vmem:[#allocation2 + $0x360] ss:$16 sps:$4 sm:$0xff]   ;;  %v2851_v24 = vld [vmem:[#allocation2 + $0x8] ss:$16 sps:$4 sm:$0xff]  }
  0x3e   :  { %1411 = vmatprep.subr.bf16.mxu0 %v2784_v25  ;;  %v2818_v54 = vld [vmem:[#allocation2 + $0x184] ss:$16 sps:$4 sm:$0xff]   ;;  %v2842_v56 = vld [vmem:[%s3437_s0] ss:$14 sps:$4 sm:$0xff]  }
  0x3f   :  { %v2820_v55 = vld [vmem:[#allocation2 + $0x384] ss:$16 sps:$4 sm:$0xff]   ;;  %v2847_v59 = vld [vmem:[%s3437_s0 + $0x20] ss:$14 sps:$4 sm:$0xff]   ;;  %v81_v60 = vrot.slane %v2842_v56, %v3291_v53 }
  0x40   :  { %1371 = vmatpush1.bf16.msra.mxu1 %v2786_v26  ;;  %v2846_v58 = vld [vmem:[%s3437_s0 + $0x4] ss:$14 sps:$4 sm:$0xff]   ;;  %v102_v1 = vrot.slane %v2847_v59, %v3291_v53  ;;  %v2893_v59 = vld [vmem:[#allocation2 + $0xe8] ss:$16 sps:$4 sm:$0xff]  }
  0x41   :  { %1412 = vmatpush1.bf16.msra.mxu0 %v2787_v27  ;;  %1372 = vmatprep.subr.bf16.mxu1 %v2788_v28  ;;  %v88_v62 = vrot.slane %v2846_v58, %v3291_v53  ;;  %v2822_v63 = vld [vmem:[#allocation2 + $0x180] ss:$16 sps:$4 sm:$0xff]   ;;  %v2824_v2 = vld [vmem:[#allocation2 + $0x1a4] ss:$16 sps:$4 sm:$0xff]   ;;  %v104_v3 = vcombine.high %v81_v60, %v95_v61  ;;  %v103_v18 = vcombine.low %v81_v60, %v95_v61  ;;  %v2859_v27 = vld [vmem:[#allocation2 + $0x2c] ss:$16 sps:$4 sm:$0xff]  }
  0x42   :  { %1413 = vmatprep.subr.bf16.mxu0 %v2790_v29  ;;  %v2823_v0 = vld [vmem:[#allocation2 + $0x380] ss:$16 sps:$4 sm:$0xff]   ;;  %v2826_v4 = vld [vmem:[#allocation2 + $0x3a4] ss:$16 sps:$4 sm:$0xff]   ;;  %v2857_v29 = vld [vmem:[#allocation2 + $0x28] ss:$16 sps:$4 sm:$0xff]  }
  0x43   :  { %v106_v5 = vcombine.high %v88_v62, %v102_v1  ;;  %v150_v6 = vpack.c.bf16 %v104_v3, %v104_v3  ;;  %v2828_v7 = vld [vmem:[#allocation2 + $0x1a0] ss:$16 sps:$4 sm:$0xff]   ;;  %v2830_v10 = vld [vmem:[#allocation2 + $0x1c4] ss:$16 sps:$4 sm:$0xff]   ;;  %v105_v19 = vcombine.low %v88_v62, %v102_v1  ;;  %v3312_v22 = vpack.c.bf16 %v103_v18, %v103_v18  ;;  %v2901_v61 = vld [vmem:[#allocation2 + $0x10c] ss:$16 sps:$4 sm:$0xff]  }
  0x44   :  { %1373 = vmatpush1.bf16.msra.mxu1 %v2792_v30  ;;  %v2829_v8 = vld [vmem:[#allocation2 + $0x3a0] ss:$16 sps:$4 sm:$0xff]   ;;  %v2832_v11 = vld [vmem:[#allocation2 + $0x3c4] ss:$16 sps:$4 sm:$0xff]   ;;  %v2899_v1 = vld [vmem:[#allocation2 + $0x108] ss:$16 sps:$4 sm:$0xff]  }
  0x45   :  { %1414 = vmatpush1.bf16.msra.mxu0 %v2793_v31  ;;  %1374 = vmatprep.subr.bf16.mxu1 %v2794_v32  ;;  %v3309_v9 = vpack.c.bf16 %v106_v5, %v106_v5  ;;  %v2834_v12 = vld [vmem:[#allocation2 + $0x1c0] ss:$16 sps:$4 sm:$0xff]   ;;  %v2836_v14 = vld [vmem:[#allocation2 + $0x1e4] ss:$16 sps:$4 sm:$0xff]   ;;  %v3314_v25 = vpack.c.bf16 %v105_v19, %v105_v19  ;;  %v2865_v31 = vld [vmem:[#allocation2 + $0x4c] ss:$16 sps:$4 sm:$0xff]  }
  0x46   :  { %1415 = vmatprep.subr.bf16.mxu0 %v2796_v33  ;;  %1390 = vmatprep.mubr.bf16.mxu1 %v150_v6  ;;  %v2835_v13 = vld [vmem:[#allocation2 + $0x3c0] ss:$16 sps:$4 sm:$0xff]   ;;  %v2838_v15 = vld [vmem:[#allocation2 + $0x3e4] ss:$16 sps:$4 sm:$0xff]   ;;  %v2863_v33 = vld [vmem:[#allocation2 + $0x48] ss:$16 sps:$4 sm:$0xff]  }
  0x47   :  { %1431 = vmatprep.mubr.bf16.mxu0 %v3309_v9  ;;  %v2840_v16 = vld [vmem:[#allocation2 + $0x1e0] ss:$16 sps:$4 sm:$0xff]   ;;  %v2850_v20 = vld [vmem:[#allocation2 + $0x404] ss:$16 sps:$4 sm:$0xff]   ;;  %v2907_v3 = vld [vmem:[#allocation2 + $0x12c] ss:$16 sps:$4 sm:$0xff]  }
  0x48   :  { %1375 = vmatpush1.bf16.msra.mxu1 %v2798_v34  ;;  %v2841_v17 = vld [vmem:[#allocation2 + $0x3e0] ss:$16 sps:$4 sm:$0xff]   ;;  %v2856_v26 = vld [vmem:[#allocation2 + $0x424] ss:$16 sps:$4 sm:$0xff]   ;;  %v2905_v5 = vld [vmem:[#allocation2 + $0x128] ss:$16 sps:$4 sm:$0xff]  }
  0x49   :  { %1416 = vmatpush1.bf16.msra.mxu0 %v2799_v35  ;;  %1376 = vmatprep.subr.bf16.mxu1 %v2800_v36  ;;  %v2848_v23 = vld [vmem:[#allocation2 + $0x400] ss:$16 sps:$4 sm:$0xff]   ;;  %v2862_v30 = vld [vmem:[#allocation2 + $0x444] ss:$16 sps:$4 sm:$0xff]   ;;  %v2871_v35 = vld [vmem:[#allocation2 + $0x6c] ss:$16 sps:$4 sm:$0xff]  }
  0x4a   :  { %1417 = vmatprep.subr.bf16.mxu0 %v2802_v37  ;;  %v2854_v28 = vld [vmem:[#allocation2 + $0x420] ss:$16 sps:$4 sm:$0xff]   ;;  %v2868_v34 = vld [vmem:[#allocation2 + $0x464] ss:$16 sps:$4 sm:$0xff]   ;;  %v2869_v37 = vld [vmem:[#allocation2 + $0x68] ss:$16 sps:$4 sm:$0xff]  }
  0x4b   :  { %v2860_v32 = vld [vmem:[#allocation2 + $0x440] ss:$16 sps:$4 sm:$0xff]   ;;  %v2874_v38 = vld [vmem:[#allocation2 + $0x484] ss:$16 sps:$4 sm:$0xff]   ;;  %v2923_v18 = vld [vmem:[#allocation2 + $0x188] ss:$16 sps:$4 sm:$0xff]  }
  0x4c   :  { %1377 = vmatpush1.bf16.msra.mxu1 %v2804_v41  ;;  %v2866_v36 = vld [vmem:[#allocation2 + $0x460] ss:$16 sps:$4 sm:$0xff]   ;;  %v2875_v41 = vld [vmem:[#allocation2 + $0x88] ss:$16 sps:$4 sm:$0xff]   ;;  %v2898_v60 = vld [vmem:[#allocation2 + $0x504] ss:$16 sps:$4 sm:$0xff]  }
  0x4d   :  { %1418 = vmatpush1.bf16.msra.mxu0 %v2805_v42  ;;  %1378 = vmatprep.subr.bf16.mxu1 %v2806_v43  ;;  %v2872_v40 = vld [vmem:[#allocation2 + $0x480] ss:$16 sps:$4 sm:$0xff]   ;;  %v2880_v42 = vld [vmem:[#allocation2 + $0x4a4] ss:$16 sps:$4 sm:$0xff]   ;;  %v2883_v43 = vld [vmem:[#allocation2 + $0xac] ss:$16 sps:$4 sm:$0xff]  }
  0x4e   :  { %1419 = vmatprep.subr.bf16.mxu0 %v2808_v44  ;;  %v2878_v44 = vld [vmem:[#allocation2 + $0x4a0] ss:$16 sps:$4 sm:$0xff]   ;;  %v2928_v19 = vld [vmem:[#allocation2 + $0x5a4] ss:$16 sps:$4 sm:$0xff]  }
  0x4f   :  { %v2890_v56 = vld [vmem:[#allocation2 + $0x4e0] ss:$16 sps:$4 sm:$0xff]  }
  0x50   :  { %1379 = vmatpush1.bf16.msra.mxu1 %v2810_v47  ;;  %v2886_v47 = vld [vmem:[#allocation2 + $0x4c4] ss:$16 sps:$4 sm:$0xff]  }
  0x51   :  { %1420 = vmatpush1.bf16.msra.mxu0 %v2811_v48  ;;  %1380 = vmatprep.subr.bf16.mxu1 %v2812_v49  ;;  %v2889_v48 = vld [vmem:[#allocation2 + $0xcc] ss:$16 sps:$4 sm:$0xff]   ;;  %v2884_v49 = vld [vmem:[#allocation2 + $0x4c0] ss:$16 sps:$4 sm:$0xff]  }
  0x52   :  { %1421 = vmatprep.subr.bf16.mxu0 %v2814_v50  ;;  %v2887_v50 = vld [vmem:[#allocation2 + $0xc8] ss:$16 sps:$4 sm:$0xff]  }
  0x54   :  { %1381 = vmatpush1.bf16.msra.mxu1 %v2816_v51  ;;  %v2892_v51 = vld [vmem:[#allocation2 + $0x4e4] ss:$16 sps:$4 sm:$0xff]  }
  0x55   :  { %1422 = vmatpush1.bf16.msra.mxu0 %v2817_v52  ;;  %1382 = vmatprep.subr.bf16.mxu1 %v2818_v54  ;;  %v2895_v52 = vld [vmem:[#allocation2 + $0xec] ss:$16 sps:$4 sm:$0xff]   ;;  %v2944_v54 = vld [vmem:[%s3437_s0 + $0x8] ss:$14 sps:$4 sm:$0xff]  }
  0x56   :  { %1423 = vmatprep.subr.bf16.mxu0 %v2820_v55  ;;  %v2947_v55 = vld [vmem:[%s3437_s0 + $0x24] ss:$14 sps:$4 sm:$0xff]   ;;  %v3325_v57 = vrot.slane %v2944_v54, %v3291_v53 }
  0x57   :  { %v3328_v58 = vrot.slane %v2947_v55, %v3291_v53  ;;  %v2965_v55 = vld [vmem:[#allocation2 + $0x288] ss:$16 sps:$4 sm:$0xff]  }
  0x58   :  { %1383 = vmatpush1.bf16.msra.mxu1 %v2822_v63  ;;  %v2896_v63 = vld [vmem:[#allocation2 + $0x500] ss:$16 sps:$4 sm:$0xff]  }
  0x59   :  { %1424 = vmatpush1.bf16.msra.mxu0 %v2823_v0  ;;  %1384 = vmatprep.subr.bf16.mxu1 %v2824_v2  ;;  %v140_v62 = vcombine.high %v3325_v57, %v3328_v58  ;;  %v2904_v2 = vld [vmem:[#allocation2 + $0x524] ss:$16 sps:$4 sm:$0xff]  }
  0x5a   :  { %1425 = vmatprep.subr.bf16.mxu0 %v2826_v4  ;;  %v2902_v4 = vld [vmem:[#allocation2 + $0x520] ss:$16 sps:$4 sm:$0xff]  }
  0x5b   :  { %v3332_v0 = vpack.c.bf16 %v140_v62, %v140_v62  ;;  %v3057_v62 = vld [vmem:[#allocation4 + $0x14] ss:$8 sps:$4 sm:$0xff]  }
  0x5c   :  { %1385 = vmatpush1.bf16.msra.mxu1 %v2828_v7  ;;  %v2913_v7 = vld [vmem:[#allocation2 + $0x14c] ss:$16 sps:$4 sm:$0xff]  }
  0x5d   :  { %1426 = vmatpush1.bf16.msra.mxu0 %v2829_v8  ;;  %1386 = vmatprep.subr.bf16.mxu1 %v2830_v10  ;;  %v2908_v8 = vld [vmem:[#allocation2 + $0x540] ss:$16 sps:$4 sm:$0xff]   ;;  %v2911_v10 = vld [vmem:[#allocation2 + $0x148] ss:$16 sps:$4 sm:$0xff]  }
  0x5e   :  { %1427 = vmatprep.subr.bf16.mxu0 %v2832_v11  ;;  %v2916_v11 = vld [vmem:[#allocation2 + $0x564] ss:$16 sps:$4 sm:$0xff]  }
  0x60   :  { %1387 = vmatpush1.bf16.msra.mxu1 %v2834_v12  ;;  %v2919_v12 = vld [vmem:[#allocation2 + $0x16c] ss:$16 sps:$4 sm:$0xff]  }
  0x61   :  { %1428 = vmatpush1.bf16.msra.mxu0 %v2835_v13  ;;  %1388 = vmatprep.subr.bf16.mxu1 %v2836_v14  ;;  %v2914_v13 = vld [vmem:[#allocation2 + $0x560] ss:$16 sps:$4 sm:$0xff]   ;;  %v2917_v14 = vld [vmem:[#allocation2 + $0x168] ss:$16 sps:$4 sm:$0xff]  }
  0x62   :  { %1429 = vmatprep.subr.bf16.mxu0 %v2838_v15  ;;  %v2922_v15 = vld [vmem:[#allocation2 + $0x584] ss:$16 sps:$4 sm:$0xff]  }
  0x64   :  { %1389 = vmatpush1.bf16.msra.mxu1 %v2840_v16  ;;  %v2925_v16 = vld [vmem:[#allocation2 + $0x18c] ss:$16 sps:$4 sm:$0xff]  }
  0x65   :  { %1430 = vmatpush1.bf16.msra.mxu0 %v2841_v17  ;;  %1522 = vmatprep.subr.bf16.mxu1 %v2853_v21  ;;  %v2920_v17 = vld [vmem:[#allocation2 + $0x580] ss:$16 sps:$4 sm:$0xff]  }
  0x66   :  { %1440 = vmatprep.subr.bf16.mxu0 %v2850_v20  ;;  %v2931_v20 = vld [vmem:[#allocation2 + $0x1ac] ss:$16 sps:$4 sm:$0xff]   ;;  %v2926_v21 = vld [vmem:[#allocation2 + $0x5a0] ss:$16 sps:$4 sm:$0xff]  }
  0x67   :  { %1391 = vmatmul.mubr.bf16.vlgmr.msra.gmra.mrb[0].mxu1 %v3312_v22 }
  0x68   :  { %1432 = vmatmul.mubr.bf16.vlgmr.msra.gmra.mrb[0].mxu0 %v3314_v25  ;;  %1523 = vmatpush1.bf16.msra.mxu1 %v2851_v24  ;;  %v2934_v24 = vld [vmem:[#allocation2 + $0x5c4] ss:$16 sps:$4 sm:$0xff]  }
  0x69   :  { %1441 = vmatpush1.bf16.msra.mxu0 %v2848_v23  ;;  %1524 = vmatprep.subr.bf16.mxu1 %v2859_v27  ;;  %v2929_v23 = vld [vmem:[#allocation2 + $0x1a8] ss:$16 sps:$4 sm:$0xff]   ;;  %v2932_v27 = vld [vmem:[#allocation2 + $0x5c0] ss:$16 sps:$4 sm:$0xff]  }
  0x6a   :  { %1442 = vmatprep.subr.bf16.mxu0 %v2856_v26  ;;  %1554 = vmatprep.mubr.bf16.mxu1 %v150_v6  ;;  %v2910_v6 = vld [vmem:[#allocation2 + $0x544] ss:$16 sps:$4 sm:$0xff]   ;;  %v2937_v26 = vld [vmem:[#allocation2 + $0x1cc] ss:$16 sps:$4 sm:$0xff]  }
  0x6b   :  { %1472 = vmatprep.mubr.bf16.mxu0 %v3332_v0 }
  0x6c   :  { %1525 = vmatpush1.bf16.msra.mxu1 %v2857_v29  ;;  %v2940_v29 = vld [vmem:[#allocation2 + $0x5e4] ss:$16 sps:$4 sm:$0xff]  }
  0x6d   :  { %1443 = vmatpush1.bf16.msra.mxu0 %v2854_v28  ;;  %1526 = vmatprep.subr.bf16.mxu1 %v2865_v31  ;;  %v2935_v28 = vld [vmem:[#allocation2 + $0x1c8] ss:$16 sps:$4 sm:$0xff]   ;;  %v2938_v31 = vld [vmem:[#allocation2 + $0x5e0] ss:$16 sps:$4 sm:$0xff]  }
  0x6e   :  { %1444 = vmatprep.subr.bf16.mxu0 %v2862_v30  ;;  %v2943_v30 = vld [vmem:[#allocation2 + $0x1ec] ss:$16 sps:$4 sm:$0xff]  }
  0x70   :  { %1527 = vmatpush1.bf16.msra.mxu1 %v2863_v33  ;;  %v2941_v33 = vld [vmem:[#allocation2 + $0x1e8] ss:$16 sps:$4 sm:$0xff]  }
  0x71   :  { %1445 = vmatpush1.bf16.msra.mxu0 %v2860_v32  ;;  %1528 = vmatprep.subr.bf16.mxu1 %v2871_v35  ;;  %v139_v32 = vcombine.low %v3325_v57, %v3328_v58  ;;  %v2952_v35 = vld [vmem:[#allocation2 + $0x20c] ss:$16 sps:$4 sm:$0xff]   ;;  %v2971_v58 = vld [vmem:[#allocation2 + $0x2c8] ss:$16 sps:$4 sm:$0xff]  }
  0x72   :  { %1446 = vmatprep.subr.bf16.mxu0 %v2868_v34  ;;  %v2946_v34 = vld [vmem:[%s3437_s0 + $0xc] ss:$14 sps:$4 sm:$0x33]  }
  0x73   :  { %v2973_v57 = vld [vmem:[#allocation2 + $0x2cc] ss:$16 sps:$4 sm:$0xff]  }
  0x74   :  { %1529 = vmatpush1.bf16.msra.mxu1 %v2869_v37  ;;  %v2949_v37 = vld [vmem:[%s3437_s0 + $0x28] ss:$14 sps:$4 sm:$0x33]  }
  0x75   :  { %1447 = vmatpush1.bf16.msra.mxu0 %v2866_v36  ;;  %1530 = vmatprep.subr.bf16.mxu1 %v2877_v39  ;;  %v2958_v36 = vld [vmem:[#allocation2 + $0x604] ss:$16 sps:$4 sm:$0xff]   ;;  %v2950_v39 = vld [vmem:[#allocation2 + $0x208] ss:$16 sps:$4 sm:$0xff]  }
  0x76   :  { %1448 = vmatprep.subr.bf16.mxu0 %v2874_v38  ;;  %v3343_v38 = vpack.c.bf16 %v139_v32, %v139_v32  ;;  %v3076_v32 = vld [vmem:[#allocation4 + $0x80] ss:$8 sps:$4 sm:$0xff]  }
  0x78   :  { %1531 = vmatpush1.bf16.msra.mxu1 %v2875_v41  ;;  %v2955_v41 = vld [vmem:[#allocation2 + $0x22c] ss:$16 sps:$4 sm:$0xff]  }
  0x79   :  { %1449 = vmatpush1.bf16.msra.mxu0 %v2872_v40  ;;  %1532 = vmatprep.subr.bf16.mxu1 %v2883_v43  ;;  %v2956_v40 = vld [vmem:[#allocation2 + $0x600] ss:$16 sps:$4 sm:$0xff]   ;;  %v138_v43 = vrot.slane %v2949_v37, %v3291_v53  ;;  %v3003_v37 = vld [vmem:[#allocation2 + $0x40c] ss:$16 sps:$4 sm:$0xff]  }
  0x7a   :  { %1450 = vmatprep.subr.bf16.mxu0 %v2880_v42  ;;  %v124_v42 = vrot.slane %v2946_v34, %v3291_v53  ;;  %v2962_v53 = vld [vmem:[#allocation2 + $0x268] ss:$16 sps:$4 sm:$0xff]   ;;  %v3081_v34 = vld [vmem:[#allocation4 + $0x94] ss:$8 sps:$4 sm:$0xff]  }
  0x7c   :  { %1533 = vmatpush1.bf16.msra.mxu1 %v2881_v45  ;;  %v2961_v45 = vld [vmem:[#allocation2 + $0x24c] ss:$16 sps:$4 sm:$0xff]  }
  0x7d   :  { %1451 = vmatpush1.bf16.msra.mxu0 %v2878_v44  ;;  %1534 = vmatprep.subr.bf16.mxu1 %v2889_v48  ;;  %v2953_v44 = vld [vmem:[#allocation2 + $0x228] ss:$16 sps:$4 sm:$0xff]   ;;  %v3048_v48 = vld [vmem:[#allocation2 + $0x60c] ss:$16 sps:$4 sm:$0xff]  }
  0x7e   :  { %1452 = vmatprep.subr.bf16.mxu0 %v2886_v47  ;;  %v3223_v47 = vmov 0  }
  0x80   :  { %1535 = vmatpush1.bf16.msra.mxu1 %v2887_v50  ;;  %v2959_v50 = vld [vmem:[#allocation2 + $0x248] ss:$16 sps:$4 sm:$0xff]  }
  0x81   :  { %1453 = vmatpush1.bf16.msra.mxu0 %v2884_v49  ;;  %1536 = vmatprep.subr.bf16.mxu1 %v2895_v52  ;;  %v141_v49 = vcombine.low %v124_v42, %v138_v43  ;;  %v3046_v52 = vld [vmem:[#allocation2 + $0x608] ss:$16 sps:$4 sm:$0xff]   ;;  %v3087_v43 = vld [vmem:[#allocation4 + $0xb4] ss:$8 sps:$4 sm:$0xff]  }
  0x82   :  { %1454 = vmatprep.subr.bf16.mxu0 %v2892_v51  ;;  %v2964_v51 = vld [vmem:[#allocation2 + $0x26c] ss:$16 sps:$4 sm:$0xff]   ;;  %v3082_v42 = vld [vmem:[#allocation4 + $0xa0] ss:$8 sps:$4 sm:$0xff]  }
  0x83   :  { %v155_v54 = vpack.c.bf16 %v141_v49, %v141_v49  ;;  %v3007_v49 = vld [vmem:[#allocation2 + $0x448] ss:$16 sps:$4 sm:$0xff]  }
  0x84   :  { %1537 = vmatpush1.bf16.msra.mxu1 %v2893_v59  ;;  %v2976_v59 = vld [vmem:[#allocation2 + $0x2ec] ss:$16 sps:$4 sm:$0xff]  }
  0x85   :  { %1455 = vmatpush1.bf16.msra.mxu0 %v2890_v56  ;;  %1538 = vmatprep.subr.bf16.mxu1 %v2901_v61  ;;  %v2970_v56 = vld [vmem:[#allocation2 + $0x2ac] ss:$16 sps:$4 sm:$0xff]  }
  0x86   :  { %1456 = vmatprep.subr.bf16.mxu0 %v2898_v60  ;;  %v3052_v60 = vld [vmem:[#allocation4] ss:$8 sps:$4 sm:$0xff]   ;;  %v3054_v61 = vld [vmem:[#allocation4 + $0x4] ss:$8 sps:$4 sm:$0xff]  }
  0x88   :  { %1539 = vmatpush1.bf16.msra.mxu1 %v2899_v1  ;;  %v3055_v1 = vld [vmem:[#allocation4 + $0x10] ss:$8 sps:$4 sm:$0xff]  }
  0x89   :  { %1457 = vmatpush1.bf16.msra.mxu0 %v2896_v63  ;;  %1540 = vmatprep.subr.bf16.mxu1 %v2907_v3  ;;  %v2974_v63 = vld [vmem:[#allocation2 + $0x2e8] ss:$16 sps:$4 sm:$0xff]   ;;  %v3060_v3 = vld [vmem:[#allocation4 + $0x24] ss:$8 sps:$4 sm:$0xff]  }
  0x8a   :  { %1458 = vmatprep.subr.bf16.mxu0 %v2904_v2  ;;  %v2979_v2 = vld [vmem:[#allocation2 + $0x30c] ss:$16 sps:$4 sm:$0xff]  }
  0x8c   :  { %1541 = vmatpush1.bf16.msra.mxu1 %v2905_v5  ;;  %v3058_v5 = vld [vmem:[#allocation4 + $0x20] ss:$8 sps:$4 sm:$0xff]  }
  0x8d   :  { %1459 = vmatpush1.bf16.msra.mxu0 %v2902_v4  ;;  %1542 = vmatprep.subr.bf16.mxu1 %v2913_v7  ;;  %v2977_v4 = vld [vmem:[#allocation2 + $0x308] ss:$16 sps:$4 sm:$0xff]   ;;  %v3063_v7 = vld [vmem:[#allocation4 + $0x34] ss:$8 sps:$4 sm:$0xff]  }
  0x8e   :  { %1460 = vmatprep.subr.bf16.mxu0 %v2910_v6  ;;  %v2982_v6 = vld [vmem:[#allocation2 + $0x32c] ss:$16 sps:$4 sm:$0xff]  }
  0x90   :  { %1543 = vmatpush1.bf16.msra.mxu1 %v2911_v10  ;;  %v3061_v10 = vld [vmem:[#allocation4 + $0x30] ss:$8 sps:$4 sm:$0xff]  }
  0x91   :  { %1461 = vmatpush1.bf16.msra.mxu0 %v2908_v8  ;;  %1544 = vmatprep.subr.bf16.mxu1 %v2919_v12  ;;  %v2980_v8 = vld [vmem:[#allocation2 + $0x328] ss:$16 sps:$4 sm:$0xff]   ;;  %v3066_v12 = vld [vmem:[#allocation4 + $0x44] ss:$8 sps:$4 sm:$0xff]  }
  0x92   :  { %1462 = vmatprep.subr.bf16.mxu0 %v2916_v11  ;;  %v2985_v11 = vld [vmem:[#allocation2 + $0x34c] ss:$16 sps:$4 sm:$0xff]  }
  0x94   :  { %1545 = vmatpush1.bf16.msra.mxu1 %v2917_v14  ;;  %v3064_v14 = vld [vmem:[#allocation4 + $0x40] ss:$8 sps:$4 sm:$0xff]  }
  0x95   :  { %1463 = vmatpush1.bf16.msra.mxu0 %v2914_v13  ;;  %1546 = vmatprep.subr.bf16.mxu1 %v2925_v16  ;;  %v2983_v13 = vld [vmem:[#allocation2 + $0x348] ss:$16 sps:$4 sm:$0xff]   ;;  %v3069_v16 = vld [vmem:[#allocation4 + $0x54] ss:$8 sps:$4 sm:$0xff]  }
  0x96   :  { %1464 = vmatprep.subr.bf16.mxu0 %v2922_v15  ;;  %v2988_v15 = vld [vmem:[#allocation2 + $0x36c] ss:$16 sps:$4 sm:$0xff]  }
  0x98   :  { %1547 = vmatpush1.bf16.msra.mxu1 %v2923_v18  ;;  %v3067_v18 = vld [vmem:[#allocation4 + $0x50] ss:$8 sps:$4 sm:$0xff]  }
  0x99   :  { %1465 = vmatpush1.bf16.msra.mxu0 %v2920_v17  ;;  %1548 = vmatprep.subr.bf16.mxu1 %v2931_v20  ;;  %v2986_v17 = vld [vmem:[#allocation2 + $0x368] ss:$16 sps:$4 sm:$0xff]   ;;  %v3072_v20 = vld [vmem:[#allocation4 + $0x64] ss:$8 sps:$4 sm:$0xff]  }
  0x9a   :  { %1466 = vmatprep.subr.bf16.mxu0 %v2928_v19  ;;  %v2991_v19 = vld [vmem:[#allocation2 + $0x38c] ss:$16 sps:$4 sm:$0xff]  }
  0x9c   :  { %1549 = vmatpush1.bf16.msra.mxu1 %v2929_v23  ;;  %v3070_v23 = vld [vmem:[#allocation4 + $0x60] ss:$8 sps:$4 sm:$0xff]  }
  0x9d   :  { %1467 = vmatpush1.bf16.msra.mxu0 %v2926_v21  ;;  %1550 = vmatprep.subr.bf16.mxu1 %v2937_v26  ;;  %v2989_v21 = vld [vmem:[#allocation2 + $0x388] ss:$16 sps:$4 sm:$0xff]   ;;  %v3075_v26 = vld [vmem:[#allocation4 + $0x74] ss:$8 sps:$4 sm:$0xff]  }
  0x9e   :  { %1468 = vmatprep.subr.bf16.mxu0 %v2934_v24  ;;  %v2994_v24 = vld [vmem:[#allocation2 + $0x3ac] ss:$16 sps:$4 sm:$0xff]  }
  0xa0   :  { %1551 = vmatpush1.bf16.msra.mxu1 %v2935_v28  ;;  %v3073_v28 = vld [vmem:[#allocation4 + $0x70] ss:$8 sps:$4 sm:$0xff]  }
  0xa1   :  { %1469 = vmatpush1.bf16.msra.mxu0 %v2932_v27  ;;  %1552 = vmatprep.subr.bf16.mxu1 %v2943_v30  ;;  %v2992_v27 = vld [vmem:[#allocation2 + $0x3a8] ss:$16 sps:$4 sm:$0xff]   ;;  %v3078_v30 = vld [vmem:[#allocation4 + $0x84] ss:$8 sps:$4 sm:$0xff]  }
  0xa2   :  { %1470 = vmatprep.subr.bf16.mxu0 %v2940_v29  ;;  %v2997_v29 = vld [vmem:[#allocation2 + $0x3cc] ss:$16 sps:$4 sm:$0xff]  }
  0xa4   :  { %1553 = vmatpush1.bf16.msra.mxu1 %v2941_v33  ;;  %v3000_v33 = vld [vmem:[#allocation2 + $0x3ec] ss:$16 sps:$4 sm:$0xff]  }
  0xa5   :  { %1471 = vmatpush1.bf16.msra.mxu0 %v2938_v31  ;;  %1563 = vmatprep.subr.bf16.mxu1 %v2952_v35  ;;  %v2995_v31 = vld [vmem:[#allocation2 + $0x3c8] ss:$16 sps:$4 sm:$0xff]  }
  0xa6   :  { %1481 = vmatprep.subr.bf16.mxu0 %v2958_v36  ;;  %v2998_v35 = vld [vmem:[#allocation2 + $0x3e8] ss:$16 sps:$4 sm:$0xff]  }
  0xa7   :  { %1555 = vmatmul.mubr.bf16.vlgmr.msra.gmra.mrb[4].mxu1 %v3312_v22  ;;  %v2967_v22 = vld [vmem:[#allocation2 + $0x28c] ss:$16 sps:$4 sm:$0xff]   ;;  %v3079_v36 = vld [vmem:[#allocation4 + $0x90] ss:$8 sps:$4 sm:$0xff]  }
  0xa8   :  { %1473 = vmatmul.mubr.bf16.vlgmr.msra.gmra.mrb[0].mxu0 %v3343_v38  ;;  %1564 = vmatpush1.bf16.msra.mxu1 %v2950_v39  ;;  %v3084_v39 = vld [vmem:[#allocation4 + $0xa4] ss:$8 sps:$4 sm:$0xff]  }
  0xa9   :  { %1482 = vmatpush1.bf16.msra.mxu0 %v2956_v40  ;;  %1565 = vmatprep.subr.bf16.mxu1 %v2955_v41  ;;  %v3001_v40 = vld [vmem:[#allocation2 + $0x408] ss:$16 sps:$4 sm:$0xff]   ;;  %v3006_v41 = vld [vmem:[#allocation2 + $0x42c] ss:$16 sps:$4 sm:$0xff]  }
  0xaa   :  { %1513 = vmatprep.mubr.bf16.mxu0 %v3223_v47  ;;  %1595 = vmatprep.mubr.bf16.mxu1 %v3309_v9  ;;  %v2968_v9 = vld [vmem:[#allocation2 + $0x2a8] ss:$16 sps:$4 sm:$0xff]  }
  0xab   :  { %1645 = vmatprep.subr.bf16.mxu0 %v3048_v48  ;;  %v3090_v48 = vld [vmem:[#allocation4 + $0xc4] ss:$8 sps:$4 sm:$0xff]  }
  0xac   :  { %1566 = vmatpush1.bf16.msra.mxu1 %v2953_v44  ;;  %v3004_v44 = vld [vmem:[#allocation2 + $0x428] ss:$16 sps:$4 sm:$0xff]  }
  0xad   :  { %1567 = vmatprep.subr.bf16.mxu1 %v2961_v45  ;;  %v3009_v45 = vld [vmem:[#allocation2 + $0x44c] ss:$16 sps:$4 sm:$0xff]  }
  0xb0   :  { %1568 = vmatpush1.bf16.msra.mxu1 %v2959_v50  ;;  %v3012_v50 = vld [vmem:[#allocation2 + $0x46c] ss:$16 sps:$4 sm:$0xff]  }
  0xb1   :  { %1569 = vmatprep.subr.bf16.mxu1 %v2964_v51  ;;  %v3088_v51 = vld [vmem:[#allocation4 + $0xc0] ss:$8 sps:$4 sm:$0xff]  }
  0xb4   :  { %2602 = vmatmul.mubr.msk.bf16.vlgmr.msra.gmra.mrb[0].mxu0 %vm1354_vm0, %v155_v54  ;;  %1570 = vmatpush1.bf16.msra.mxu1 %v2962_v53  ;;  %v3093_v53 = vld [vmem:[#allocation4 + $0xd4] ss:$8 sps:$4 sm:$0xff]  }
  0xb5   :  { %1646 = vmatpush1.bf16.msra.mxu0 %v3046_v52  ;;  %1571 = vmatprep.subr.bf16.mxu1 %v2967_v22  ;;  %v3015_v52 = vld [vmem:[#allocation2 + $0x48c] ss:$16 sps:$4 sm:$0xff]  }
  0xb6   :  { %1677 = vmatprep.mubr.bf16.mxu0 %v3223_v47  ;;  %2094 = vmatprep.subr.bf16.mxu0 %v3054_v61  ;;  %v3085_v47 = vld [vmem:[#allocation4 + $0xb0] ss:$8 sps:$4 sm:$0xff]   ;;  %v3018_v22 = vld [vmem:[#allocation2 + $0x4ac] ss:$16 sps:$4 sm:$0xff]  }
  0xb7   :  { %v3030_v61 = vld [vmem:[#allocation2 + $0x52c] ss:$16 sps:$4 sm:$0xff]  }
  0xb8   :  { %1572 = vmatpush1.bf16.msra.mxu1 %v2965_v55  ;;  %v3016_v55 = vld [vmem:[#allocation2 + $0x4a8] ss:$16 sps:$4 sm:$0xff]  }
  0xb9   :  { %1573 = vmatprep.subr.bf16.mxu1 %v2970_v56  ;;  %v3021_v56 = vld [vmem:[#allocation2 + $0x4cc] ss:$16 sps:$4 sm:$0xff]  }
  0xbc   :  { %2603 = vmatmul.mubr.msk.bf16.vlgmr.msra.gmra.mrb[4].mxu0 %vm1354_vm0, %v155_v54  ;;  %1574 = vmatpush1.bf16.msra.mxu1 %v2968_v9  ;;  %v3013_v54 = vld [vmem:[#allocation2 + $0x488] ss:$16 sps:$4 sm:$0xff]  }
  0xbd   :  { %1575 = vmatprep.subr.bf16.mxu1 %v2973_v57  ;;  %2095 = vmatpush1.bf16.msra.mxu0 %v3052_v60  ;;  %v3019_v9 = vld [vmem:[#allocation2 + $0x4c8] ss:$16 sps:$4 sm:$0xff]   ;;  %v3024_v57 = vld [vmem:[#allocation2 + $0x4ec] ss:$16 sps:$4 sm:$0xff]  }
  0xbe   :  { %2096 = vmatprep.subr.bf16.mxu0 %v3057_v62  ;;  %v3025_v60 = vld [vmem:[#allocation2 + $0x508] ss:$16 sps:$4 sm:$0xff]   ;;  %v3096_v62 = vld [vmem:[#allocation4 + $0xe4] ss:$8 sps:$4 sm:$0xff]  }
  0xc0   :  { %1576 = vmatpush1.bf16.msra.mxu1 %v2971_v58  ;;  %v3022_v58 = vld [vmem:[#allocation2 + $0x4e8] ss:$16 sps:$4 sm:$0xff]  }
  0xc1   :  { %1577 = vmatprep.subr.bf16.mxu1 %v2976_v59  ;;  %2097 = vmatpush1.bf16.msra.mxu0 %v3055_v1  ;;  %v3027_v59 = vld [vmem:[#allocation2 + $0x50c] ss:$16 sps:$4 sm:$0xff]   ;;  %v3094_v1 = vld [vmem:[#allocation4 + $0xe0] ss:$8 sps:$4 sm:$0xff]  }
  0xc2   :  { %2098 = vmatprep.subr.bf16.mxu0 %v3060_v3  ;;  %v3099_v3 = vld [vmem:[#allocation4 + $0xf4] ss:$8 sps:$4 sm:$0xff]  }
  0xc4   :  { %1578 = vmatpush1.bf16.msra.mxu1 %v2974_v63  ;;  %v3028_v63 = vld [vmem:[#allocation2 + $0x528] ss:$16 sps:$4 sm:$0xff]  }
  0xc5   :  { %1579 = vmatprep.subr.bf16.mxu1 %v2979_v2  ;;  %2099 = vmatpush1.bf16.msra.mxu0 %v3058_v5  ;;  %v3033_v2 = vld [vmem:[#allocation2 + $0x54c] ss:$16 sps:$4 sm:$0xff]   ;;  %v3097_v5 = vld [vmem:[#allocation4 + $0xf0] ss:$8 sps:$4 sm:$0xff]  }
  0xc6   :  { %2100 = vmatprep.subr.bf16.mxu0 %v3063_v7  ;;  %v3034_v7 = vld [vmem:[#allocation2 + $0x568] ss:$16 sps:$4 sm:$0xff]  }
  0xc8   :  { %1580 = vmatpush1.bf16.msra.mxu1 %v2977_v4  ;;  %v3031_v4 = vld [vmem:[#allocation2 + $0x548] ss:$16 sps:$4 sm:$0xff]  }
  0xc9   :  { %1581 = vmatprep.subr.bf16.mxu1 %v2982_v6  ;;  %2101 = vmatpush1.bf16.msra.mxu0 %v3061_v10  ;;  %v3036_v6 = vld [vmem:[#allocation2 + $0x56c] ss:$16 sps:$4 sm:$0xff]  }
  0xca   :  { %2102 = vmatprep.subr.bf16.mxu0 %v3066_v12  ;;  %v3102_v10 = vld [vmem:[#allocation4 + $0x104] ss:$8 sps:$4 sm:$0xff]  }
  0xcb   :  { %v3042_v12 = vld [vmem:[#allocation2 + $0x5ac] ss:$16 sps:$4 sm:$0xff]  }
  0xcc   :  { %1582 = vmatpush1.bf16.msra.mxu1 %v2980_v8  ;;  %v3039_v8 = vld [vmem:[#allocation2 + $0x58c] ss:$16 sps:$4 sm:$0xff]  }
  0xcd   :  { %1583 = vmatprep.subr.bf16.mxu1 %v2985_v11  ;;  %2103 = vmatpush1.bf16.msra.mxu0 %v3064_v14  ;;  %v3037_v11 = vld [vmem:[#allocation2 + $0x588] ss:$16 sps:$4 sm:$0xff]   ;;  %v3045_v14 = vld [vmem:[#allocation2 + $0x5cc] ss:$16 sps:$4 sm:$0xff]  }
  0xce   :  { %2104 = vmatprep.subr.bf16.mxu0 %v3069_v16  ;;  %v3051_v16 = vld [vmem:[#allocation2 + $0x5ec] ss:$16 sps:$4 sm:$0xff]  }
  0xd0   :  { %1584 = vmatpush1.bf16.msra.mxu1 %v2983_v13  ;;  %v3040_v13 = vld [vmem:[#allocation2 + $0x5a8] ss:$16 sps:$4 sm:$0xff]  }
  0xd1   :  { %1585 = vmatprep.subr.bf16.mxu1 %v2988_v15  ;;  %2105 = vmatpush1.bf16.msra.mxu0 %v3067_v18  ;;  %v3043_v15 = vld [vmem:[#allocation2 + $0x5c8] ss:$16 sps:$4 sm:$0xff]  }
  0xd2   :  { %2106 = vmatprep.subr.bf16.mxu0 %v3072_v20 }
  0xd4   :  { %1586 = vmatpush1.bf16.msra.mxu1 %v2986_v17  ;;  %v3049_v17 = vld [vmem:[#allocation2 + $0x5e8] ss:$16 sps:$4 sm:$0xff]  }
  0xd5   :  { %1587 = vmatprep.subr.bf16.mxu1 %v2991_v19  ;;  %2107 = vmatpush1.bf16.msra.mxu0 %v3070_v23  ;;  %v356_v23 = vsub.s32 0, %v3288_v46 }
  0xd6   :  { %2108 = vmatprep.subr.bf16.mxu0 %v3075_v26  ;;  %v360_v26 = vsub.s32 1, %v3288_v46 }
  0xd8   :  { %1588 = vmatpush1.bf16.msra.mxu1 %v2989_v21 }
  0xd9   :  { %1589 = vmatprep.subr.bf16.mxu1 %v2994_v24  ;;  %2109 = vmatpush1.bf16.msra.mxu0 %v3073_v28  ;;  %v3357_v24 = vld [vmem:[%s3439_s2] sm:$0xf] }
  0xda   :  { %2110 = vmatprep.subr.bf16.mxu0 %v3078_v30 }
  0xdc   :  { %1590 = vmatpush1.bf16.msra.mxu1 %v2992_v27  ;;  %v357_v27 = vrot.slane %v3357_v24, %v356_v23 }
  0xdd   :  { %1591 = vmatprep.subr.bf16.mxu1 %v2997_v29  ;;  %2111 = vmatpush1.bf16.msra.mxu0 %v3076_v32 }
  0xde   :  { %2112 = vmatprep.subr.bf16.mxu0 %v3081_v34  ;;  %v3149_v34 = vld [vmem:[%s3442_s5] sm:$0xff]  }
  0xe0   :  { %1592 = vmatpush1.bf16.msra.mxu1 %v2995_v31 }
  0xe1   :  { %1593 = vmatprep.subr.bf16.mxu1 %v3000_v33  ;;  %2113 = vmatpush1.bf16.msra.mxu0 %v3079_v36  ;;  %v3148_v33 = vld [vmem:[%s3442_s5 + $0x40] sm:$0xff]  }
  0xe2   :  { %2114 = vmatprep.subr.bf16.mxu0 %v3084_v39 }
  0xe4   :  { %1594 = vmatpush1.bf16.msra.mxu1 %v2998_v35  ;;  %v3150_v35 = vld [vmem:[%s3442_s5 + $0x48] sm:$0xff]  }
  0xe5   :  { %1604 = vmatprep.subr.bf16.mxu1 %v3003_v37  ;;  %2115 = vmatpush1.bf16.msra.mxu0 %v3082_v42  ;;  %v3151_v42 = vld [vmem:[%s3442_s5 + $0x8] sm:$0xff]  }
  0xe6   :  { %2116 = vmatprep.subr.bf16.mxu0 %v3087_v43 }
  0xe7   :  { %1596 = vmatmul.mubr.bf16.vlgmr.msra.gmra.mrb[4].mxu1 %v3314_v25  ;;  %v3010_v25 = vld [vmem:[#allocation2 + $0x468] ss:$16 sps:$4 sm:$0xff]  }
  0xe8   :  { %1605 = vmatpush1.bf16.msra.mxu1 %v3001_v40  ;;  %1636 = vmatprep.mubr.bf16.mxu1 %v3332_v0  ;;  %v3091_v0 = vld [vmem:[#allocation4 + $0xd0] ss:$8 sps:$4 sm:$0xff]  }
  0xe9   :  { %1606 = vmatprep.subr.bf16.mxu1 %v3006_v41  ;;  %2117 = vmatpush1.bf16.msra.mxu0 %v3085_v47 }
  0xea   :  { %2118 = vmatprep.subr.bf16.mxu0 %v3090_v48  ;;  %v3100_v48 = vld [vmem:[#allocation4 + $0x100] ss:$8 sps:$4 sm:$0xff]  }
  0xec   :  { %1607 = vmatpush1.bf16.msra.mxu1 %v3004_v44  ;;  %v3152_v44 = vld [vmem:[%s3442_s5 + $0x50] sm:$0xff]  }
  0xed   :  { %1608 = vmatprep.subr.bf16.mxu1 %v3009_v45  ;;  %2119 = vmatpush1.bf16.msra.mxu0 %v3088_v51 }
  0xee   :  { %2120 = vmatprep.subr.bf16.mxu0 %v3093_v53  ;;  %v3105_v53 = vld [vmem:[#allocation4 + $0x114] ss:$8 sps:$4 sm:$0xff]  }
  0xf0   :  { %1609 = vmatpush1.bf16.msra.mxu1 %v3007_v49 }
  0xf1   :  { %1610 = vmatprep.subr.bf16.mxu1 %v3012_v50  ;;  %2121 = vmatpush1.bf16.msra.mxu0 %v3091_v0  ;;  %v3153_v50 = vld [vmem:[%s3442_s5 + $0x10] sm:$0xff]  }
  0xf2   :  { %2122 = vmatprep.subr.bf16.mxu0 %v3096_v62  ;;  %v3114_v62 = vld [vmem:[#allocation4 + $0x144] ss:$8 sps:$4 sm:$0xff]  }
  0xf4   :  { %1611 = vmatpush1.bf16.msra.mxu1 %v3010_v25 }
  0xf5   :  { %1612 = vmatprep.subr.bf16.mxu1 %v3015_v52  ;;  %2123 = vmatpush1.bf16.msra.mxu0 %v3094_v1  ;;  %v3154_v52 = vld [vmem:[%s3442_s5 + $0x58] sm:$0xff]  }
  0xf6   :  { %2124 = vmatprep.subr.bf16.mxu0 %v3099_v3  ;;  %v3117_v1 = vld [vmem:[#allocation4 + $0x154] ss:$8 sps:$4 sm:$0xff]   ;;  %v3120_v3 = vld [vmem:[#allocation4 + $0x164] ss:$8 sps:$4 sm:$0xff]  }
  0xf8   :  { %1613 = vmatpush1.bf16.msra.mxu1 %v3013_v54 }
  0xf9   :  { %1614 = vmatprep.subr.bf16.mxu1 %v3018_v22  ;;  %2125 = vmatpush1.bf16.msra.mxu0 %v3097_v5  ;;  %v3103_v22 = vld [vmem:[#allocation4 + $0x110] ss:$8 sps:$4 sm:$0xff]   ;;  %v3123_v5 = vld [vmem:[#allocation4 + $0x174] ss:$8 sps:$4 sm:$0xff]  }
  0xfa   :  { %2135 = vmatprep.subr.bf16.mxu0 %v3102_v10  ;;  %v3129_v10 = vld [vmem:[#allocation4 + $0x194] ss:$8 sps:$4 sm:$0xff]  }
  0xfc   :  { %1615 = vmatpush1.bf16.msra.mxu1 %v3016_v55  ;;  %v3155_v55 = vld [vmem:[%s3442_s5 + $0x18] sm:$0xff]  }
  0xfd   :  { %1616 = vmatprep.subr.bf16.mxu1 %v3021_v56  ;;  %v3108_v56 = vld [vmem:[#allocation4 + $0x124] ss:$8 sps:$4 sm:$0xff]  }
 0x100   :  { %1617 = vmatpush1.bf16.msra.mxu1 %v3019_v9  ;;  %v3156_v9 = vld [vmem:[%s3442_s5 + $0x60] sm:$0xff]  }
 0x101   :  { %1618 = vmatprep.subr.bf16.mxu1 %v3024_v57  ;;  %v3106_v57 = vld [vmem:[#allocation4 + $0x120] ss:$8 sps:$4 sm:$0xff]  }
 0x104   :  { %1619 = vmatpush1.bf16.msra.mxu1 %v3022_v58  ;;  %v3157_v58 = vld [vmem:[%s3442_s5 + $0x20] sm:$0xff]  }
 0x105   :  { %1620 = vmatprep.subr.bf16.mxu1 %v3027_v59  ;;  %v3111_v59 = vld [vmem:[#allocation4 + $0x134] ss:$8 sps:$4 sm:$0xff]  }
 0x108   :  { %1621 = vmatpush1.bf16.msra.mxu1 %v3025_v60  ;;  %v3158_v60 = vld [vmem:[%s3442_s5 + $0x68] sm:$0xff]  }
 0x109   :  { %1622 = vmatprep.subr.bf16.mxu1 %v3030_v61  ;;  %v3109_v61 = vld [vmem:[#allocation4 + $0x130] ss:$8 sps:$4 sm:$0xff]  }
 0x10c   :  { %1623 = vmatpush1.bf16.msra.mxu1 %v3028_v63  ;;  %v3112_v63 = vld [vmem:[#allocation4 + $0x140] ss:$8 sps:$4 sm:$0xff]  }
 0x10d   :  { %1624 = vmatprep.subr.bf16.mxu1 %v3033_v2  ;;  %v3115_v2 = vld [vmem:[#allocation4 + $0x150] ss:$8 sps:$4 sm:$0xff]  }
 0x110   :  { %1625 = vmatpush1.bf16.msra.mxu1 %v3031_v4  ;;  %v3118_v4 = vld [vmem:[#allocation4 + $0x160] ss:$8 sps:$4 sm:$0xff]  }
 0x111   :  { %1626 = vmatprep.subr.bf16.mxu1 %v3036_v6  ;;  %v3121_v6 = vld [vmem:[#allocation4 + $0x170] ss:$8 sps:$4 sm:$0xff]  }
 0x114   :  { %1627 = vmatpush1.bf16.msra.mxu1 %v3034_v7  ;;  %v3126_v7 = vld [vmem:[#allocation4 + $0x184] ss:$8 sps:$4 sm:$0xff]  }
 0x115   :  { %1628 = vmatprep.subr.bf16.mxu1 %v3039_v8  ;;  %v3124_v8 = vld [vmem:[#allocation4 + $0x180] ss:$8 sps:$4 sm:$0xff]  }
 0x118   :  { %1629 = vmatpush1.bf16.msra.mxu1 %v3037_v11  ;;  %v3127_v11 = vld [vmem:[#allocation4 + $0x190] ss:$8 sps:$4 sm:$0xff]  }
 0x119   :  { %1630 = vmatprep.subr.bf16.mxu1 %v3042_v12  ;;  %v3132_v12 = vld [vmem:[#allocation4 + $0x1a4] ss:$8 sps:$4 sm:$0xff]  }
 0x11c   :  { %1631 = vmatpush1.bf16.msra.mxu1 %v3040_v13  ;;  %v3130_v13 = vld [vmem:[#allocation4 + $0x1a0] ss:$8 sps:$4 sm:$0xff]  }
 0x11d   :  { %1632 = vmatprep.subr.bf16.mxu1 %v3045_v14  ;;  %v3135_v14 = vld [vmem:[#allocation4 + $0x1b4] ss:$8 sps:$4 sm:$0xff]  }
 0x120   :  { %1633 = vmatpush1.bf16.msra.mxu1 %v3043_v15  ;;  %v3133_v15 = vld [vmem:[#allocation4 + $0x1b0] ss:$8 sps:$4 sm:$0xff]  }
 0x121   :  { %1634 = vmatprep.subr.bf16.mxu1 %v3051_v16  ;;  %v3138_v16 = vld [vmem:[#allocation4 + $0x1c4] ss:$8 sps:$4 sm:$0xff]  }
 0x124   :  { %1635 = vmatpush1.bf16.msra.mxu1 %v3049_v17  ;;  %v3136_v17 = vld [vmem:[#allocation4 + $0x1c0] ss:$8 sps:$4 sm:$0xff]  }
 0x125   :  { %2686 = vmatprep.subr.bf16.mxu1 %v3148_v33 }
 0x127   :  { %1637 = vmatmul.mubr.bf16.vlgmr.msra.gmra.mrb[4].mxu1 %v3343_v38  ;;  %v361_v38 = vrot.slane %v3357_v24, %v360_v26 }
 0x128   :  { %2687 = vmatpush3.bf16.msra.mxu1 %v3149_v34 }
 0x129   :  { %2688 = vmatprep.subr.bf16.mxu1 %v3150_v35 }
 0x12c   :  { %2689 = vmatpush3.bf16.msra.mxu1 %v3151_v42 }
 0x12d   :  { %2690 = vmatprep.subr.bf16.mxu1 %v3152_v44 }
 0x130   :  { %2691 = vmatpush3.bf16.msra.mxu1 %v3153_v50  ;;  %v3162_v50 = vld [vmem:[%s3442_s5 + $0x78] sm:$0xff]  }
 0x131   :  { %2692 = vmatprep.subr.bf16.mxu1 %v3154_v52 }
 0x134   :  { %2693 = vmatpush3.bf16.msra.mxu1 %v3155_v55 }
 0x135   :  { %2694 = vmatprep.subr.bf16.mxu1 %v3156_v9 }
 0x138   :  { %2695 = vmatpush3.bf16.msra.mxu1 %v3157_v58 }
 0x139   :  { %2696 = vmatprep.subr.bf16.mxu1 %v3158_v60 }
 0x13a   :  { %v1392_v18 = vpop.f32.mrb[0].mxu1 }
 0x13b   :  { %v1394_v19 = vpop.f32.mrb[1].mxu1  ;;  %v1393_v28 = vadd.f32 %v1392_v18, %v357_v27  ;;  %v3141_v18 = vld [vmem:[#allocation4 + $0x1d4] ss:$8 sps:$4 sm:$0xff]  }
 0x13c   :  { %v1396_v20 = vpop.f32.mrb[2].mxu1  ;;  %v1395_v29 = vadd.f32 %v1394_v19, %v361_v38  ;;  %v3139_v19 = vld [vmem:[#allocation4 + $0x1d0] ss:$8 sps:$4 sm:$0xff]   ;;  %v3147_v27 = vld [vmem:[#allocation4 + $0x1f4] ss:$8 sps:$4 sm:$0xff]  }
 0x13d   :  { %v1397_v21 = vpop.f32.mrb[3].mxu1  ;;  %v3144_v20 = vld [vmem:[#allocation4 + $0x1e4] ss:$8 sps:$4 sm:$0xff]   ;;  %v3145_v38 = vld [vmem:[#allocation4 + $0x1f0] ss:$8 sps:$4 sm:$0xff]  }
 0x13e   :  { %v3142_v21 = vld [vmem:[#allocation4 + $0x1e0] ss:$8 sps:$4 sm:$0xff]  }
 0x187   :  { %v1515_v30 = vpop.f32.mrb[0].mxu0 }
 0x188   :  { %v2709_v31 = vadd.f32 %v1515_v30, %v1393_v28  ;;  %v1517_v32 = vpop.f32.mrb[1].mxu0  ;;  %v364_v28 = vsub.s32 2, %v3288_v46 }
 0x189   :  { %v2711_v36 = vadd.f32 %v1517_v32, %v1395_v29  ;;  %v1519_v37 = vpop.f32.mrb[2].mxu0  ;;  %v368_v29 = vsub.s32 3, %v3288_v46  ;;  %v2668_v46 = vld [vmem:[%s3443_s6] ss:$0 sm:$0xff] }
 0x18a   :  { %v1686_v39 = vmul.f32 0.2, %v2709_v31  ;;  %v1520_v40 = vpop.f32.mrb[3].mxu0  ;;  %v365_v30 = vrot.slane %v3357_v24, %v364_v28 }
 0x18b   :  { %v1687_v41 = vmul.f32 0.2, %v2711_v36 }
 0x18c   :  { %v1690_v43 = vmax.f32 %v2709_v31, %v1686_v39  ;;  %v369_v31 = vrot.slane %v3357_v24, %v368_v29  ;;  %v3159_v24 = vld [vmem:[%s3442_s5 + $0x28] sm:$0xff]  }
 0x18d   :  { %v1691_v45 = vmax.f32 %v2711_v36, %v1687_v41  ;;  %2697 = vmatpush3.bf16.msra.mxu1 %v3159_v24 }
 0x18e   :  { %v1694_v51 = vpack.c.bf16 %v1690_v43, %v1690_v43 }
 0x18f   :  { %v1695_v47 = vpack.c.bf16 %v1691_v45, %v1691_v45  ;;  %v3381_v49 = vpop.f32.mrb[4].mxu0 }
 0x190   :  { %v3386_v25 = vpop.f32.mrb[5].mxu0 }
 0x191   :  { %2126 = vmatprep.mubr.bf16.mxu0 %v1695_v47  ;;  %v1683_v0 = vpop.f32.mrb[6].mxu0 }
 0x192   :  { %2127 = vmatmul.mubr.bf16.vlgmr.msra.gmra.mrb[8].mxu0 %v1694_v51  ;;  %v1684_v54 = vpop.f32.mrb[7].mxu0  ;;  %v3163_v51 = vld [vmem:[%s3442_s5 + $0x38] sm:$0xff]  }
 0x193   :  { %2136 = vmatpush1.bf16.msra.mxu0 %v3100_v48  ;;  %v3160_v48 = vld [vmem:[%s3442_s5 + $0x70] sm:$0xff]  }
 0x194   :  { %2137 = vmatprep.subr.bf16.mxu0 %v3105_v53  ;;  %2698 = vmatprep.subr.bf16.mxu1 %v3160_v48  ;;  %v1762_v53 = vld [vmem:[%s3441_s4] sm:$0x3] }
 0x195   :  { %v1771_v52 = vrot.slane %v1762_v53, %v360_v26 }
 0x197   :  { %2138 = vmatpush1.bf16.msra.mxu0 %v3103_v22 }
 0x198   :  { %2139 = vmatprep.subr.bf16.mxu0 %v3108_v56 }
 0x19b   :  { %2140 = vmatpush1.bf16.msra.mxu0 %v3106_v57 }
 0x19c   :  { %2141 = vmatprep.subr.bf16.mxu0 %v3111_v59 }
 0x19f   :  { %2142 = vmatpush1.bf16.msra.mxu0 %v3109_v61 }
 0x1a0   :  { %2143 = vmatprep.subr.bf16.mxu0 %v3114_v62 }
 0x1a3   :  { %2144 = vmatpush1.bf16.msra.mxu0 %v3112_v63 }
 0x1a4   :  { %2145 = vmatprep.subr.bf16.mxu0 %v3117_v1 }
 0x1a7   :  { %2146 = vmatpush1.bf16.msra.mxu0 %v3115_v2 }
 0x1a8   :  { %2147 = vmatprep.subr.bf16.mxu0 %v3120_v3 }
 0x1ab   :  { %2148 = vmatpush1.bf16.msra.mxu0 %v3118_v4 }
 0x1ac   :  { %2149 = vmatprep.subr.bf16.mxu0 %v3123_v5 }
 0x1af   :  { %2150 = vmatpush1.bf16.msra.mxu0 %v3121_v6 }
 0x1b0   :  { %2151 = vmatprep.subr.bf16.mxu0 %v3126_v7 }
 0x1b3   :  { %2152 = vmatpush1.bf16.msra.mxu0 %v3124_v8 }
 0x1b4   :  { %2153 = vmatprep.subr.bf16.mxu0 %v3129_v10 }
 0x1b7   :  { %2154 = vmatpush1.bf16.msra.mxu0 %v3127_v11 }
 0x1b8   :  { %2155 = vmatprep.subr.bf16.mxu0 %v3132_v12 }
 0x1bb   :  { %2156 = vmatpush1.bf16.msra.mxu0 %v3130_v13 }
 0x1bc   :  { %2157 = vmatprep.subr.bf16.mxu0 %v3135_v14 }
 0x1bf   :  { %2158 = vmatpush1.bf16.msra.mxu0 %v3133_v15 }
 0x1c0   :  { %2159 = vmatprep.subr.bf16.mxu0 %v3138_v16 }
 0x1c3   :  { %2160 = vmatpush1.bf16.msra.mxu0 %v3136_v17 }
 0x1c4   :  { %2161 = vmatprep.subr.bf16.mxu0 %v3141_v18 }
 0x1c7   :  { %2162 = vmatpush1.bf16.msra.mxu0 %v3139_v19 }
 0x1c8   :  { %2163 = vmatprep.subr.bf16.mxu0 %v3144_v20 }
 0x1cb   :  { %2164 = vmatpush1.bf16.msra.mxu0 %v3142_v21 }
 0x1cc   :  { %2165 = vmatprep.subr.bf16.mxu0 %v3147_v27 }
 0x1cf   :  { %2166 = vmatpush1.bf16.msra.mxu0 %v3145_v38 }
 0x1fa   :  { %v1638_v32 = vpop.f32.mrb[4].mxu1 }
 0x1fb   :  { %v2712_v33 = vadd.f32 %v1638_v32, %v365_v30  ;;  %v1640_v34 = vpop.f32.mrb[5].mxu1 }
 0x1fc   :  { %v2714_v35 = vadd.f32 %v1640_v34, %v369_v31  ;;  %v1642_v36 = vpop.f32.mrb[6].mxu1 }
 0x1fd   :  { %v2713_v37 = vadd.f32 %v2712_v33, %v3381_v49  ;;  %v1643_v39 = vpop.f32.mrb[7].mxu1  ;;  %v3161_v49 = vld [vmem:[%s3442_s5 + $0x30] sm:$0xff]  }
 0x1fe   :  { %v2715_v40 = vadd.f32 %v2714_v35, %v3386_v25  ;;  %2699 = vmatpush3.bf16.msra.mxu1 %v3161_v49  ;;  %v1767_v25 = vrot.slane %v1762_v53, %v356_v23 }
 0x1ff   :  { %v1688_v41 = vmul.f32 0.2, %v2713_v37  ;;  %2700 = vmatprep.subr.bf16.mxu1 %v3162_v50 }
 0x200   :  { %v1689_v42 = vmul.f32 0.2, %v2715_v40 }
 0x201   :  { %v1692_v43 = vmax.f32 %v2713_v37, %v1688_v41 }
 0x202   :  { %v1693_v44 = vmax.f32 %v2715_v40, %v1689_v42  ;;  %2701 = vmatpush3.bf16.msra.mxu1 %v3163_v51 }
 0x203   :  { %v1696_v47 = vpack.c.bf16 %v1692_v43, %v1692_v43 }
 0x204   :  { %v1697_v45 = vpack.c.bf16 %v1693_v44, %v1693_v44 }
 0x206   :  { %2167 = vmatprep.mubr.bf16.mxu0 %v1697_v45 }
 0x207   :  { %2168 = vmatmul.mubr.bf16.vlgmr.msra.gmra.mrb[8].mxu0 %v1696_v47 }
 0x2da   :  { %v2169_v0 = vpop.f32.mrb[8].mxu0 }
 0x2db   :  { %v2716_v54 = vadd.f32 %v2169_v0, %v1767_v25  ;;  %v2171_v22 = vpop.f32.mrb[9].mxu0 }
 0x2dc   :  { %v2717_v55 = vadd.f32 %v2171_v22, %v1771_v52  ;;  %v2173_v56 = vpop.f32.mrb[10].mxu0 }
 0x2dd   :  { %v2176_v9 = vmul.f32 0.2, %v2716_v54  ;;  %v2174_v57 = vpop.f32.mrb[11].mxu0 }
 0x2de   :  { %v2177_v58 = vmul.f32 0.2, %v2717_v55 }
 0x2df   :  { %v2178_v59 = vmax.f32 %v2716_v54, %v2176_v9 }
 0x2e0   :  { %v2179_v60 = vmax.f32 %v2717_v55, %v2177_v58 }
 0x2e1   :  { %v2180_v62 = vpack.c.bf16 %v2178_v59, %v2178_v59 }
 0x2e2   :  { %v2181_v61 = vpack.c.bf16 %v2179_v60, %v2179_v60 }
 0x2e4   :  { %2349 = vmatprep.mubr.bf16.mxu1 %v2181_v61 }
 0x2e5   :  { %2350 = vmatmul.mubr.bf16.vlgmr.msra.gmra.mrb[8].mxu1 %v2180_v62 }
 0x3b8   :  { %v2702_v63 = vpop.f32.mrb[8].mxu1 }
 0x3b9   :  { %v2703_v23 = vpop.f32.mrb[9].mxu1 }
 0x3ba   :  { %v2704_v26 = vadd.f32 %v2703_v23, %v2702_v63  ;;  %v2705_v1 = vpop.f32.mrb[10].mxu1 }
 0x3bb   :  { %v2706_v2 = vpop.f32.mrb[11].mxu1 }
 0x3bc   :  { %v2352_v3 = vadd.f32 %v2704_v26, %v2668_v46 }
 0x3be   :  { %v2685_v4 = vmul.f32 -1.442695, %v2352_v3 }
 0x3c0   :  { %3164 = vpow2.f32 %v2685_v4 }
 0x3ca   :  { %v3165_v5 = vpop.eup %3164 }
 0x3cb   :  { %v2360_v6 = vadd.f32 1.0, %v3165_v5 }
 0x3cd   :  { %3166 = vrcp.f32 %v2360_v6 }
 0x3d7   :  { %v3167_v7 = vpop.eup %3166 }
 0x3d8   :  { %2364 = vst.msk [vmem:[#allocation6] sm:$0xff] %vm2363_vm1, %v3167_v7 }
 0x3df   :  { %v2382_v8 = vld [vmem:[#allocation6] sm:$0x3] }
 0x3e0   :  { %2383 = vst [vmem:[%s3444_s7] sm:$0x3] %v2382_v8 }
 0x3e1   :  { %2400 = vsyncpa [#allocation3], 1 }
 0x3e2   :  { %2401 = vsyncpa [#allocation5], 1 }

</bundles_post_ra>
